<compile_context>
chip_gen: v7x
topology: tpu7x:2x2x1
jax: 0.10.0
libtpu: 0.0.40
codegen_flags: <defaults>
</compile_context>

<pallas_src>
import functools

import jax
import jax.numpy as jnp
from jax import lax
from jax.experimental import pallas as pl
from jax.experimental.pallas import tpu as pltpu


def _round_up(x, m):
    return ((x + m - 1) // m) * m


def _convlstm_kernel(x_ref, h_ref, c_ref, w_ref, b_ref, h_out_ref, c_out_ref,
                     slab_ref, col_ref, *, H, W, KH, KW, pad, halo, activation):
    """One batch element per grid step.

    x_ref    : (1, Cx,   H*W)            compute_dtype
    h_ref    : (1, Cout, H*W)            compute_dtype
    c_ref    : (1, Cout, H*W)            float32
    w_ref    : (4*Cout, KH*KW*Cin_pad)   compute_dtype
    b_ref    : (4*Cout, 1)               float32
    h_out/c_out : (1, Cout, H*W)         float32
    slab_ref : (Cin_pad, H*W + 2*halo)   VMEM scratch (zero halo + current image)
    col_ref  : (KH*KW*Cin_pad, H*W)      VMEM scratch (masked im2col)
    """
    Cx = x_ref.shape[1]
    Cout = h_ref.shape[1]
    Cin = Cx + Cout
    Cin_pad = slab_ref.shape[0]
    HW = H * W

    if activation == "tanh":
        act = jnp.tanh
    elif activation == "relu":
        act = lambda v: jnp.maximum(v, 0.0)
    else:
        raise ValueError(activation)

    # Zero-filled slab (halo lanes + channel-pad rows), then write the current
    # image into the lane-aligned interior.  Rows [0:Cx] = X, [Cx:Cin] = H_prev,
    # matching the cin order of torch.cat([X, H_prev], dim=1).  Zeroing the
    # whole slab costs a handful of vst per step and keeps the kernel correct
    # under megacore batch splitting (every core's scratch is initialised).
    slab_ref[...] = jnp.zeros(slab_ref.shape, slab_ref.dtype)
    slab_ref[0:Cx, halo:halo + HW] = x_ref[0]
    slab_ref[Cx:Cin, halo:halo + HW] = h_ref[0]

    # x-coordinate (column inside an image row) of every flattened-spatial
    # lane; horizontal-wrap masks precomputed once per distinct dx (shared by
    # all kh rows of the kernel window).
    col_x = lax.broadcasted_iota(jnp.int32, (1, HW), 1) % W
    masks = {}
    for kw in range(KW):
        dx = kw - pad
        if dx != 0 and dx not in masks:
            masks[dx] = (col_x + dx >= 0) & (col_x + dx < W)

    # Masked im2col: tap (kh, kw) is a flat lane shift of (kh-pad)*W + (kw-pad)
    # on the zero-haloed slab.  Vertical out-of-range reads land in the zero
    # halo; only horizontal wrap-around into the neighbouring image row must be
    # masked (and only for taps with dx != 0).
    for kh in range(KH):
        for kw in range(KW):
            t = kh * KW + kw
            dx = kw - pad
            shift = (kh - pad) * W + dx
            patch = slab_ref[:, halo + shift:halo + shift + HW]   # (Cin_pad, HW)
            if dx != 0:
                patch = jnp.where(masks[dx], patch, jnp.zeros_like(patch))
            col_ref[t * Cin_pad:(t + 1) * Cin_pad, :] = patch

    # Single fused conv matmul on the MXU: (4Cout, K) @ (K, HW), f32 accumulate.
    acc = jnp.dot(w_ref[...], col_ref[...], preferred_element_type=jnp.float32)
    acc = acc + b_ref[...]                         # (4Cout, 1) lane-broadcast

    # Gate order matches torch.chunk(conv_out, 4, dim=1): i, f, C, o.
    i_g = jax.nn.sigmoid(acc[0 * Cout:1 * Cout, :])
    f_g = jax.nn.sigmoid(acc[1 * Cout:2 * Cout, :])
    c_c = act(acc[2 * Cout:3 * Cout, :])
    o_g = jax.nn.sigmoid(acc[3 * Cout:4 * Cout, :])

    c_new = f_g * c_ref[0] + i_g * c_c             # (Cout, HW) f32
    h_new = o_g * act(c_new)

    c_out_ref[...] = c_new.reshape(c_out_ref.shape)
    h_out_ref[...] = h_new.reshape(h_out_ref.shape)


def conv_lstm_cell(X, H_prev, C_prev, weight, bias, *, padding, activation,
                   compute_dtype=jnp.bfloat16):
    """X, H_prev, C_prev: NCHW float32 (PyTorch convention).

    weight: (4*Cout, Cx+Cout, KH, KW)  (PyTorch Conv2d OIHW layout)
    bias:   (4*Cout,)
    Returns (H, C) in NCHW float32.
    """
    N, Cx, Hh, Ww = X.shape
    Cout = H_prev.shape[1]
    C4, Cin, KH, KW = weight.shape
    assert C4 == 4 * Cout and Cin == Cx + Cout
    assert H_prev.shape == (N, Cout, Hh, Ww) and C_prev.shape == (N, Cout, Hh, Ww)
    # The kernel (and, across time steps, the module itself: C_prev must match
    # the conv output spatially) requires a stride-1 'same' convolution.
    assert KH == KW and 2 * padding == KH - 1, (
        "conv_lstm_cell kernel supports stride-1 'same' conv only "
        "(2*padding == kernel_size - 1)")

    HW = Hh * Ww
    # Zero halo on both sides of the flattened image (>= padding*W + padding),
    # rounded up to a 128-lane multiple so interior stores are lane-aligned.
    halo = _round_up(padding * Ww + padding, 128) if padding > 0 else 0
    S = HW + 2 * halo
    Cin_pad = _round_up(Cin, 16)      # packing-aligned im2col row groups

    # NCHW -> (N, C, H*W): metadata-only reshape, no extra HBM pass.  In a full
    # model X / H_prev / weights would already live in bf16; the casts are the
    # only elementwise work left in the wrapper.
    x2 = X.reshape(N, Cx, HW).astype(compute_dtype)
    h2 = H_prev.reshape(N, Cout, HW).astype(compute_dtype)
    c2 = C_prev.reshape(N, Cout, HW)                       # state stays f32

    # Conv weight (C4, Cin, KH, KW) -> (C4, KH*KW*Cin_pad); column order is
    # [tap = kh*KW + kw][cin], zero-padded to Cin_pad, matching the im2col rows.
    w4 = jnp.transpose(weight, (0, 2, 3, 1))               # (C4, KH, KW, Cin)
    w4 = jnp.zeros((C4, KH, KW, Cin_pad), weight.dtype).at[..., :Cin].set(w4)
    w2 = w4.reshape(C4, KH * KW * Cin_pad).astype(compute_dtype)
    b2 = bias.reshape(C4, 1).astype(jnp.float32)

    kernel = functools.partial(
        _convlstm_kernel, H=Hh, W=Ww, KH=KH, KW=KW, pad=padding, halo=halo,
        activation=activation)

    # TODO(synk): for large images (v7x's 64 MiB VMEM) add a second "parallel"
    # grid axis tiling output rows with a (KH-1)-row input halo.
    h_out, c_out = pl.pallas_call(
        kernel,
        out_shape=(
            jax.ShapeDtypeStruct((N, Cout, HW), jnp.float32),
            jax.ShapeDtypeStruct((N, Cout, HW), jnp.float32),
        ),
        grid_spec=pltpu.PrefetchScalarGridSpec(
            num_scalar_prefetch=0,
            grid=(N,),
            in_specs=[
                pl.BlockSpec((1, Cx, HW), lambda n: (n, 0, 0)),
                pl.BlockSpec((1, Cout, HW), lambda n: (n, 0, 0)),
                pl.BlockSpec((1, Cout, HW), lambda n: (n, 0, 0)),
                pl.BlockSpec((C4, KH * KW * Cin_pad), lambda n: (0, 0)),
                pl.BlockSpec((C4, 1), lambda n: (0, 0)),
            ],
            out_specs=[
                pl.BlockSpec((1, Cout, HW), lambda n: (n, 0, 0)),
                pl.BlockSpec((1, Cout, HW), lambda n: (n, 0, 0)),
            ],
            scratch_shapes=[
                pltpu.VMEM((Cin_pad, S), compute_dtype),              # haloed image
                pltpu.VMEM((KH * KW * Cin_pad, HW), compute_dtype),   # im2col
            ],
        ),
        compiler_params=pltpu.CompilerParams(
            dimension_semantics=("parallel",),
        ),
    )(x2, h2, c2, w2, b2)

    return (h_out.reshape(N, Cout, Hh, Ww), c_out.reshape(N, Cout, Hh, Ww))


def _reference(X, H_prev, C_prev, weight, bias, *, padding, activation):
    """Pure-JAX reference matching the PyTorch module exactly (NCHW, f32)."""
    act = jnp.tanh if activation == "tanh" else (lambda x: jnp.maximum(x, 0.0))
    xh = jnp.concatenate([X, H_prev], axis=1)
    conv = lax.conv_general_dilated(
        xh, weight, window_strides=(1, 1),
        padding=((padding, padding), (padding, padding)),
        dimension_numbers=("NCHW", "OIHW", "NCHW"))
    conv = conv + bias.reshape(1, -1, 1, 1)
    i_c, f_c, c_c, o_c = jnp.split(conv, 4, axis=1)
    i_g = jax.nn.sigmoid(i_c)
    f_g = jax.nn.sigmoid(f_c)
    o_g = jax.nn.sigmoid(o_c)
    C = f_g * C_prev + i_g * act(c_c)
    H = o_g * act(C)
    return H, C


if __name__ == "__main__":
    # Small shapes consistent with the module's forward.
    N, Cx, Cout = 2, 4, 8
    Hs = Ws = 16
    KH = KW = 3
    padding = 1
    activation = "tanh"

    key = jax.random.PRNGKey(0)
    kx, kh, kc, kwt, kb = jax.random.split(key, 5)

    X = jax.random.normal(kx, (N, Cx, Hs, Ws), jnp.float32)
    H_prev = jax.random.normal(kh, (N, Cout, Hs, Ws), jnp.float32)
    C_prev = jax.random.normal(kc, (N, Cout, Hs, Ws), jnp.float32)

    # Deterministic params (shapes per nn.Conv2d(Cx+Cout, 4*Cout, 3, padding=1)).
    fan_in = (Cx + Cout) * KH * KW
    bound = 1.0 / (fan_in ** 0.5)
    weight = jax.random.uniform(kwt, (4 * Cout, Cx + Cout, KH, KW),
                                jnp.float32, -bound, bound)
    bias = jax.random.uniform(kb, (4 * Cout,), jnp.float32, -bound, bound)

    cell = jax.jit(functools.partial(conv_lstm_cell,
                                     padding=padding, activation=activation))
    H_new, C_new = cell(X, H_prev, C_prev, weight, bias)
    jax.block_until_ready((H_new, C_new))

    # Tight check: reference on the same bf16-quantised conv inputs the kernel
    # uses (f32 gate math in both), so only accumulation-order / transcendental
    # differences remain.
    Xq = X.astype(jnp.bfloat16).astype(jnp.float32)
    Hq = H_prev.astype(jnp.bfloat16).astype(jnp.float32)
    Wq = weight.astype(jnp.bfloat16).astype(jnp.float32)
    H_ref, C_ref = _reference(Xq, Hq, C_prev, Wq, bias,
                              padding=padding, activation=activation)
    assert jnp.allclose(H_new, H_ref, atol=5e-3, rtol=5e-3), \
        float(jnp.max(jnp.abs(H_new - H_ref)))
    assert jnp.allclose(C_new, C_ref, atol=5e-3, rtol=5e-3), \
        float(jnp.max(jnp.abs(C_new - C_ref)))

    # Loose sanity check against the exact float32 module semantics
    # (difference is purely bf16 quantisation of the conv inputs).
    H_f32, C_f32 = _reference(X, H_prev, C_prev, weight, bias,
                              padding=padding, activation=activation)
    assert float(jnp.max(jnp.abs(H_new - H_f32))) < 1e-1
    assert float(jnp.max(jnp.abs(C_new - C_f32))) < 1e-1

    print("KERNEL_OK")
</pallas_src>

<mosaic_0001>
module attributes {stable_mosaic.version = 11 : i64} {
  func.func @_convlstm_kernel(%arg0: i32, %arg1: memref<1x4x256xbf16, #tpu.memory_space<vmem>>, %arg2: memref<1x8x256xbf16, #tpu.memory_space<vmem>>, %arg3: memref<1x8x256xf32, #tpu.memory_space<vmem>>, %arg4: memref<32x144xbf16, #tpu.memory_space<vmem>>, %arg5: memref<32x1xf32, #tpu.memory_space<vmem>>, %arg6: memref<1x8x256xf32, #tpu.memory_space<vmem>>, %arg7: memref<1x8x256xf32, #tpu.memory_space<vmem>>, %arg8: memref<16x512xbf16, #tpu.memory_space<vmem>>, %arg9: memref<144x256xbf16, #tpu.memory_space<vmem>>) attributes {dimension_semantics = [#tpu.dimension_semantics<parallel>], iteration_bounds = array<i64: 2>, scalar_prefetch = 0 : i64, scratch_operands = 2 : i64, tpu.core_type = #tpu.core_type<tc>, window_params = [{transform_indices = @transform_0, window_bounds = array<i64: 1, 4, 256>}, {transform_indices = @transform_1, window_bounds = array<i64: 1, 8, 256>}, {transform_indices = @transform_2, window_bounds = array<i64: 1, 8, 256>}, {pipeline_mode = #tpu.pipeline_mode<synchronous>, transform_indices = @transform_3, window_bounds = array<i64: 32, 144>}, {pipeline_mode = #tpu.pipeline_mode<synchronous>, transform_indices = @transform_4, window_bounds = array<i64: 32, 1>}, {transform_indices = @transform_5, window_bounds = array<i64: 1, 8, 256>}, {transform_indices = @transform_6, window_bounds = array<i64: 1, 8, 256>}]} {
    %cst = arith.constant 0.000000e+00 : bf16
    %0 = vector.broadcast %cst : bf16 to vector<16x512xbf16>
    %c0 = arith.constant 0 : index
    %c0_0 = arith.constant 0 : index
    %1 = vector.load %arg8[%c0, %c0_0] : memref<16x512xbf16, #tpu.memory_space<vmem>>, vector<16x512xbf16>
    tpu.vector_store %arg8[%c0, %c0_0], %0 {strides = array<i32>} : memref<16x512xbf16, #tpu.memory_space<vmem>>, vector<16x512xbf16>,
    %c0_1 = arith.constant 0 : index
    %c0_2 = arith.constant 0 : index
    %c0_3 = arith.constant 0 : index
    %2 = vector.load %arg1[%c0_1, %c0_2, %c0_3] : memref<1x4x256xbf16, #tpu.memory_space<vmem>>, vector<1x4x256xbf16>
    %3 = vector.shape_cast %2 : vector<1x4x256xbf16> to vector<4x256xbf16>
    %c0_4 = arith.constant 0 : index
    %c128 = arith.constant 128 : index
    %4 = vector.load %arg8[%c0_4, %c128] : memref<16x512xbf16, #tpu.memory_space<vmem>>, vector<4x256xbf16>
    tpu.vector_store %arg8[%c0_4, %c128], %3 {strides = array<i32>} : memref<16x512xbf16, #tpu.memory_space<vmem>>, vector<4x256xbf16>,
    %c0_5 = arith.constant 0 : index
    %c0_6 = arith.constant 0 : index
    %c0_7 = arith.constant 0 : index
    %5 = vector.load %arg2[%c0_5, %c0_6, %c0_7] : memref<1x8x256xbf16, #tpu.memory_space<vmem>>, vector<1x8x256xbf16>
    %6 = vector.shape_cast %5 : vector<1x8x256xbf16> to vector<8x256xbf16>
    %c4 = arith.constant 4 : index
    %c128_8 = arith.constant 128 : index
    %7 = vector.load %arg8[%c4, %c128_8] : memref<16x512xbf16, #tpu.memory_space<vmem>>, vector<8x256xbf16>
    tpu.vector_store %arg8[%c4, %c128_8], %6 {strides = array<i32>} : memref<16x512xbf16, #tpu.memory_space<vmem>>, vector<8x256xbf16>,
    %8 = tpu.iota {dimensions = array<i32: 1>} : vector<1x256xi32>
    %c16_i32 = arith.constant 16 : i32
    %c0_i32 = arith.constant 0 : i32
    %9 = arith.cmpi eq, %c16_i32, %c0_i32 : i32
    %c1_i32 = arith.constant 1 : i32
    %10 = arith.select %9, %c1_i32, %c16_i32 : i32
    %11 = vector.broadcast %10 : i32 to vector<1x256xi32>
    %12 = arith.remsi %8, %11 : vector<1x256xi32>
    %c0_i32_9 = arith.constant 0 : i32
    %13 = vector.broadcast %c0_i32_9 : i32 to vector<1x256xi32>
    %14 = arith.cmpi ne, %12, %13 : vector<1x256xi32>
    %c0_i32_10 = arith.constant 0 : i32
    %15 = vector.broadcast %c0_i32_10 : i32 to vector<1x256xi32>
    %16 = arith.cmpi slt, %12, %15 : vector<1x256xi32>
    %c0_i32_11 = arith.constant 0 : i32
    %17 = arith.cmpi slt, %10, %c0_i32_11 : i32
    %18 = vector.broadcast %17 : i1 to vector<1x256xi1>
    %19 = vector.broadcast %18 : vector<1x256xi1> to vector<1x256xi1>
    %20 = arith.xori %16, %19 : vector<1x256xi1>
    %21 = arith.andi %20, %14 : vector<1x256xi1>
    %22 = vector.broadcast %10 : i32 to vector<1x256xi32>
    %23 = arith.addi %12, %22 : vector<1x256xi32>
    %24 = arith.select %21, %23, %12 : vector<1x256xi1>, vector<1x256xi32>
    %c-1_i32 = arith.constant -1 : i32
    %25 = vector.broadcast %c-1_i32 : i32 to vector<1x256xi32>
    %26 = arith.addi %24, %25 : vector<1x256xi32>
    %c0_i32_12 = arith.constant 0 : i32
    %27 = vector.broadcast %c0_i32_12 : i32 to vector<1x256xi32>
    %28 = arith.cmpi sge, %26, %27 : vector<1x256xi32>
    %c-1_i32_13 = arith.constant -1 : i32
    %29 = vector.broadcast %c-1_i32_13 : i32 to vector<1x256xi32>
    %30 = arith.addi %24, %29 : vector<1x256xi32>
    %c16_i32_14 = arith.constant 16 : i32
    %31 = vector.broadcast %c16_i32_14 : i32 to vector<1x256xi32>
    %32 = arith.cmpi slt, %30, %31 : vector<1x256xi32>
    %33 = arith.andi %28, %32 : vector<1x256xi1>
    %c1_i32_15 = arith.constant 1 : i32
    %34 = vector.broadcast %c1_i32_15 : i32 to vector<1x256xi32>
    %35 = arith.addi %24, %34 : vector<1x256xi32>
    %c0_i32_16 = arith.constant 0 : i32
    %36 = vector.broadcast %c0_i32_16 : i32 to vector<1x256xi32>
    %37 = arith.cmpi sge, %35, %36 : vector<1x256xi32>
    %c1_i32_17 = arith.constant 1 : i32
    %38 = vector.broadcast %c1_i32_17 : i32 to vector<1x256xi32>
    %39 = arith.addi %24, %38 : vector<1x256xi32>
    %c16_i32_18 = arith.constant 16 : i32
    %40 = vector.broadcast %c16_i32_18 : i32 to vector<1x256xi32>
    %41 = arith.cmpi slt, %39, %40 : vector<1x256xi32>
    %42 = arith.andi %37, %41 : vector<1x256xi1>
    %c0_19 = arith.constant 0 : index
    %c111 = arith.constant 111 : index
    %43 = vector.load %arg8[%c0_19, %c111] : memref<16x512xbf16, #tpu.memory_space<vmem>>, vector<16x256xbf16>
    %cst_20 = arith.constant 0.000000e+00 : bf16
    %44 = vector.broadcast %cst_20 : bf16 to vector<16x256xbf16>
    %45 = vector.shape_cast %33 : vector<1x256xi1> to vector<1x256xi1>
    %46 = vector.broadcast %45 : vector<1x256xi1> to vector<16x256xi1>
    %47 = arith.select %46, %43, %44 : vector<16x256xi1>, vector<16x256xbf16>
    %c0_21 = arith.constant 0 : index
    %c0_22 = arith.constant 0 : index
    %48 = vector.load %arg9[%c0_21, %c0_22] : memref<144x256xbf16, #tpu.memory_space<vmem>>, vector<16x256xbf16>
    tpu.vector_store %arg9[%c0_21, %c0_22], %47 {strides = array<i32>} : memref<144x256xbf16, #tpu.memory_space<vmem>>, vector<16x256xbf16>,
    %c0_23 = arith.constant 0 : index
    %c112 = arith.constant 112 : index
    %49 = vector.load %arg8[%c0_23, %c112] : memref<16x512xbf16, #tpu.memory_space<vmem>>, vector<16x256xbf16>
    %c16 = arith.constant 16 : index
    %c0_24 = arith.constant 0 : index
    %50 = vector.load %arg9[%c16, %c0_24] : memref<144x256xbf16, #tpu.memory_space<vmem>>, vector<16x256xbf16>
    tpu.vector_store %arg9[%c16, %c0_24], %49 {strides = array<i32>} : memref<144x256xbf16, #tpu.memory_space<vmem>>, vector<16x256xbf16>,
    %c0_25 = arith.constant 0 : index
    %c113 = arith.constant 113 : index
    %51 = vector.load %arg8[%c0_25, %c113] : memref<16x512xbf16, #tpu.memory_space<vmem>>, vector<16x256xbf16>
    %cst_26 = arith.constant 0.000000e+00 : bf16
    %52 = vector.broadcast %cst_26 : bf16 to vector<16x256xbf16>
    %53 = vector.shape_cast %42 : vector<1x256xi1> to vector<1x256xi1>
    %54 = vector.broadcast %53 : vector<1x256xi1> to vector<16x256xi1>
    %55 = arith.select %54, %51, %52 : vector<16x256xi1>, vector<16x256xbf16>
    %c32 = arith.constant 32 : index
    %c0_27 = arith.constant 0 : index
    %56 = vector.load %arg9[%c32, %c0_27] : memref<144x256xbf16, #tpu.memory_space<vmem>>, vector<16x256xbf16>
    tpu.vector_store %arg9[%c32, %c0_27], %55 {strides = array<i32>} : memref<144x256xbf16, #tpu.memory_space<vmem>>, vector<16x256xbf16>,
    %c0_28 = arith.constant 0 : index
    %c127 = arith.constant 127 : index
    %57 = vector.load %arg8[%c0_28, %c127] : memref<16x512xbf16, #tpu.memory_space<vmem>>, vector<16x256xbf16>
    %cst_29 = arith.constant 0.000000e+00 : bf16
    %58 = vector.broadcast %cst_29 : bf16 to vector<16x256xbf16>
    %59 = vector.shape_cast %33 : vector<1x256xi1> to vector<1x256xi1>
    %60 = vector.broadcast %59 : vector<1x256xi1> to vector<16x256xi1>
    %61 = arith.select %60, %57, %58 : vector<16x256xi1>, vector<16x256xbf16>
    %c48 = arith.constant 48 : index
    %c0_30 = arith.constant 0 : index
    %62 = vector.load %arg9[%c48, %c0_30] : memref<144x256xbf16, #tpu.memory_space<vmem>>, vector<16x256xbf16>
    tpu.vector_store %arg9[%c48, %c0_30], %61 {strides = array<i32>} : memref<144x256xbf16, #tpu.memory_space<vmem>>, vector<16x256xbf16>,
    %c0_31 = arith.constant 0 : index
    %c128_32 = arith.constant 128 : index
    %63 = vector.load %arg8[%c0_31, %c128_32] : memref<16x512xbf16, #tpu.memory_space<vmem>>, vector<16x256xbf16>
    %c64 = arith.constant 64 : index
    %c0_33 = arith.constant 0 : index
    %64 = vector.load %arg9[%c64, %c0_33] : memref<144x256xbf16, #tpu.memory_space<vmem>>, vector<16x256xbf16>
    tpu.vector_store %arg9[%c64, %c0_33], %63 {strides = array<i32>} : memref<144x256xbf16, #tpu.memory_space<vmem>>, vector<16x256xbf16>,
    %c0_34 = arith.constant 0 : index
    %c129 = arith.constant 129 : index
    %65 = vector.load %arg8[%c0_34, %c129] : memref<16x512xbf16, #tpu.memory_space<vmem>>, vector<16x256xbf16>
    %cst_35 = arith.constant 0.000000e+00 : bf16
    %66 = vector.broadcast %cst_35 : bf16 to vector<16x256xbf16>
    %67 = vector.shape_cast %42 : vector<1x256xi1> to vector<1x256xi1>
    %68 = vector.broadcast %67 : vector<1x256xi1> to vector<16x256xi1>
    %69 = arith.select %68, %65, %66 : vector<16x256xi1>, vector<16x256xbf16>
    %c80 = arith.constant 80 : index
    %c0_36 = arith.constant 0 : index
    %70 = vector.load %arg9[%c80, %c0_36] : memref<144x256xbf16, #tpu.memory_space<vmem>>, vector<16x256xbf16>
    tpu.vector_store %arg9[%c80, %c0_36], %69 {strides = array<i32>} : memref<144x256xbf16, #tpu.memory_space<vmem>>, vector<16x256xbf16>,
    %c0_37 = arith.constant 0 : index
    %c143 = arith.constant 143 : index
    %71 = vector.load %arg8[%c0_37, %c143] : memref<16x512xbf16, #tpu.memory_space<vmem>>, vector<16x256xbf16>
    %cst_38 = arith.constant 0.000000e+00 : bf16
    %72 = vector.broadcast %cst_38 : bf16 to vector<16x256xbf16>
    %73 = vector.shape_cast %33 : vector<1x256xi1> to vector<1x256xi1>
    %74 = vector.broadcast %73 : vector<1x256xi1> to vector<16x256xi1>
    %75 = arith.select %74, %71, %72 : vector<16x256xi1>, vector<16x256xbf16>
    %c96 = arith.constant 96 : index
    %c0_39 = arith.constant 0 : index
    %76 = vector.load %arg9[%c96, %c0_39] : memref<144x256xbf16, #tpu.memory_space<vmem>>, vector<16x256xbf16>
    tpu.vector_store %arg9[%c96, %c0_39], %75 {strides = array<i32>} : memref<144x256xbf16, #tpu.memory_space<vmem>>, vector<16x256xbf16>,
    %c0_40 = arith.constant 0 : index
    %c144 = arith.constant 144 : index
    %77 = vector.load %arg8[%c0_40, %c144] : memref<16x512xbf16, #tpu.memory_space<vmem>>, vector<16x256xbf16>
    %c112_41 = arith.constant 112 : index
    %c0_42 = arith.constant 0 : index
    %78 = vector.load %arg9[%c112_41, %c0_42] : memref<144x256xbf16, #tpu.memory_space<vmem>>, vector<16x256xbf16>
    tpu.vector_store %arg9[%c112_41, %c0_42], %77 {strides = array<i32>} : memref<144x256xbf16, #tpu.memory_space<vmem>>, vector<16x256xbf16>,
    %c0_43 = arith.constant 0 : index
    %c145 = arith.constant 145 : index
    %79 = vector.load %arg8[%c0_43, %c145] : memref<16x512xbf16, #tpu.memory_space<vmem>>, vector<16x256xbf16>
    %cst_44 = arith.constant 0.000000e+00 : bf16
    %80 = vector.broadcast %cst_44 : bf16 to vector<16x256xbf16>
    %81 = vector.shape_cast %42 : vector<1x256xi1> to vector<1x256xi1>
    %82 = vector.broadcast %81 : vector<1x256xi1> to vector<16x256xi1>
    %83 = arith.select %82, %79, %80 : vector<16x256xi1>, vector<16x256xbf16>
    %c128_45 = arith.constant 128 : index
    %c0_46 = arith.constant 0 : index
    %84 = vector.load %arg9[%c128_45, %c0_46] : memref<144x256xbf16, #tpu.memory_space<vmem>>, vector<16x256xbf16>
    tpu.vector_store %arg9[%c128_45, %c0_46], %83 {strides = array<i32>} : memref<144x256xbf16, #tpu.memory_space<vmem>>, vector<16x256xbf16>,
    %c0_47 = arith.constant 0 : index
    %c0_48 = arith.constant 0 : index
    %85 = vector.load %arg4[%c0_47, %c0_48] : memref<32x144xbf16, #tpu.memory_space<vmem>>, vector<32x144xbf16>
    %c0_49 = arith.constant 0 : index
    %c0_50 = arith.constant 0 : index
    %86 = vector.load %arg9[%c0_49, %c0_50] : memref<144x256xbf16, #tpu.memory_space<vmem>>, vector<144x256xbf16>
    %cst_51 = arith.constant dense<0.000000e+00> : vector<32x256xf32>
    %87 = tpu.matmul %85, %86, %cst_51 {dimension_numbers = #tpu.dot_dimension_numbers<[1], [0], [0], [1], [0, 0, 1, 1], [], []>} : vector<32x144xbf16>, vector<144x256xbf16>, vector<32x256xf32> -> vector<32x256xf32>
    %c0_52 = arith.constant 0 : index
    %c0_53 = arith.constant 0 : index
    %88 = vector.load %arg5[%c0_52, %c0_53] : memref<32x1xf32, #tpu.memory_space<vmem>>, vector<32x1xf32>
    %89 = vector.broadcast %88 : vector<32x1xf32> to vector<32x256xf32>
    %90 = arith.addf %87, %89 : vector<32x256xf32>
    %91 = vector.extract_strided_slice %90 {offsets = [0, 0], sizes = [8, 256], strides = [1, 1]} : vector<32x256xf32> to vector<8x256xf32>
    %92 = arith.negf %91 : vector<8x256xf32>
    %93 = math.exp %92 : vector<8x256xf32>
    %cst_54 = arith.constant 1.000000e+00 : f32
    %94 = vector.broadcast %cst_54 : f32 to vector<8x256xf32>
    %95 = arith.addf %94, %93 : vector<8x256xf32>
    %96 = arith.divf %94, %95 : vector<8x256xf32>
    %97 = vector.extract_strided_slice %90 {offsets = [8, 0], sizes = [8, 256], strides = [1, 1]} : vector<32x256xf32> to vector<8x256xf32>
    %98 = arith.negf %97 : vector<8x256xf32>
    %99 = math.exp %98 : vector<8x256xf32>
    %cst_55 = arith.constant 1.000000e+00 : f32
    %100 = vector.broadcast %cst_55 : f32 to vector<8x256xf32>
    %101 = arith.addf %100, %99 : vector<8x256xf32>
    %102 = arith.divf %100, %101 : vector<8x256xf32>
    %103 = vector.extract_strided_slice %90 {offsets = [16, 0], sizes = [8, 256], strides = [1, 1]} : vector<32x256xf32> to vector<8x256xf32>
    %104 = math.tanh %103 : vector<8x256xf32>
    %105 = vector.extract_strided_slice %90 {offsets = [24, 0], sizes = [8, 256], strides = [1, 1]} : vector<32x256xf32> to vector<8x256xf32>
    %106 = arith.negf %105 : vector<8x256xf32>
    %107 = math.exp %106 : vector<8x256xf32>
    %cst_56 = arith.constant 1.000000e+00 : f32
    %108 = vector.broadcast %cst_56 : f32 to vector<8x256xf32>
    %109 = arith.addf %108, %107 : vector<8x256xf32>
    %110 = arith.divf %108, %109 : vector<8x256xf32>
    %c0_57 = arith.constant 0 : index
    %c0_58 = arith.constant 0 : index
    %c0_59 = arith.constant 0 : index
    %111 = vector.load %arg3[%c0_57, %c0_58, %c0_59] : memref<1x8x256xf32, #tpu.memory_space<vmem>>, vector<1x8x256xf32>
    %112 = vector.shape_cast %111 : vector<1x8x256xf32> to vector<8x256xf32>
    %113 = arith.mulf %102, %112 : vector<8x256xf32>
    %114 = arith.mulf %96, %104 : vector<8x256xf32>
    %115 = arith.addf %113, %114 : vector<8x256xf32>
    %116 = math.tanh %115 : vector<8x256xf32>
    %117 = arith.mulf %110, %116 : vector<8x256xf32>
    %118 = vector.shape_cast %115 : vector<8x256xf32> to vector<1x8x256xf32>
    %c0_60 = arith.constant 0 : index
    %c0_61 = arith.constant 0 : index
    %c0_62 = arith.constant 0 : index
    %119 = vector.load %arg7[%c0_60, %c0_61, %c0_62] : memref<1x8x256xf32, #tpu.memory_space<vmem>>, vector<1x8x256xf32>
    tpu.vector_store %arg7[%c0_60, %c0_61, %c0_62], %118 {strides = array<i32>} : memref<1x8x256xf32, #tpu.memory_space<vmem>>, vector<1x8x256xf32>,
    %120 = vector.shape_cast %117 : vector<8x256xf32> to vector<1x8x256xf32>
    %c0_63 = arith.constant 0 : index
    %c0_64 = arith.constant 0 : index
    %c0_65 = arith.constant 0 : index
    %121 = vector.load %arg6[%c0_63, %c0_64, %c0_65] : memref<1x8x256xf32, #tpu.memory_space<vmem>>, vector<1x8x256xf32>
    tpu.vector_store %arg6[%c0_63, %c0_64, %c0_65], %120 {strides = array<i32>} : memref<1x8x256xf32, #tpu.memory_space<vmem>>, vector<1x8x256xf32>,
    return
  }
  func.func @transform_0(%arg0: i32) -> (i32, i32, i32) {
    %c0_i32 = arith.constant 0 : i32
    %c0_i32_0 = arith.constant 0 : i32
    %c0_i32_1 = arith.constant 0 : i32
    return %arg0, %c0_i32, %c0_i32_0 : i32, i32, i32
  }
  func.func @transform_1(%arg0: i32) -> (i32, i32, i32) {
    %c0_i32 = arith.constant 0 : i32
    %c0_i32_0 = arith.constant 0 : i32
    %c0_i32_1 = arith.constant 0 : i32
    return %arg0, %c0_i32, %c0_i32_0 : i32, i32, i32
  }
  func.func @transform_2(%arg0: i32) -> (i32, i32, i32) {
    %c0_i32 = arith.constant 0 : i32
    %c0_i32_0 = arith.constant 0 : i32
    %c0_i32_1 = arith.constant 0 : i32
    return %arg0, %c0_i32, %c0_i32_0 : i32, i32, i32
  }
  func.func @transform_3(%arg0: i32) -> (i32, i32) {
    %c0_i32 = arith.constant 0 : i32
    %c0_i32_0 = arith.constant 0 : i32
    %c0_i32_1 = arith.constant 0 : i32
    return %c0_i32, %c0_i32_0 : i32, i32
  }
  func.func @transform_4(%arg0: i32) -> (i32, i32) {
    %c0_i32 = arith.constant 0 : i32
    %c0_i32_0 = arith.constant 0 : i32
    %c0_i32_1 = arith.constant 0 : i32
    return %c0_i32, %c0_i32_0 : i32, i32
  }
  func.func @transform_5(%arg0: i32) -> (i32, i32, i32) {
    %c0_i32 = arith.constant 0 : i32
    %c0_i32_0 = arith.constant 0 : i32
    %c0_i32_1 = arith.constant 0 : i32
    return %arg0, %c0_i32, %c0_i32_0 : i32, i32, i32
  }
  func.func @transform_6(%arg0: i32) -> (i32, i32, i32) {
    %c0_i32 = arith.constant 0 : i32
    %c0_i32_0 = arith.constant 0 : i32
    %c0_i32_1 = arith.constant 0 : i32
    return %arg0, %c0_i32, %c0_i32_0 : i32, i32, i32
  }
}

</mosaic_0001>

<bundles_post_ra>
// kernel: conv_lstm_cell.1
= control target key start
LH: loop header
LB: loop body
LE: loop exit
PB: predicated region body
PF: predicated region fallthrough
CT: control target
= control target key end

     0   :  { %s1087_s21 = smov 0   ;;  %s1232_s0 = inlined_call_operand.vmem [shape: bf16[2,4,256], index: 0, kind: input, shape index: {}]   ;;  %s1233_s1 = inlined_call_operand.vmem [shape: bf16[2,8,256], index: 1, kind: input, shape index: {}]   ;;  %s1234_s2 = inlined_call_operand.vmem [shape: f32[2,8,256], index: 2, kind: input, shape index: {}]   ;;  %s1235_s3 = inlined_call_operand.vmem [shape: bf16[32,144], index: 3, kind: input, shape index: {}]   ;;  %s1236_s4 = inlined_call_operand.vmem [shape: f32[32,1], index: 4, kind: input, shape index: {}]   ;;  %s1237_s5 = inlined_call_operand.vmem [shape: f32[2,8,256], index: 5, kind: output, shape index: {0}]   ;;  %s1238_s6 = inlined_call_operand.vmem [shape: f32[2,8,256], index: 6, kind: output, shape index: {1}]  }
   0x1 LB: > { %s921_s22 = sadd.s32 4294967295, %s1041_s21   ;;  %p925_p0 = scmp.ge.s32.totalorder %s1041_s21, 1  ;;  %s1041_s21 = sphi %s1087_s21, %s17_s21  }
   0x2   : > { %p235_p1 = scmp.lt.s32.totalorder %s1041_s21, 3 }
   0x4   : > { %p236_p2 = pnand %p925_p0, %p235_p1 }
   0x5   : > { %v338_v0 = vlaneseq (!%p236_p2)  ;;  %v1043_v1 = vmov (!%p236_p2), 0   ;;  %p280_p3 = scmp.lt.s32.totalorder (!%p236_p2), %s921_s22, 1  ;;  %s1044_s7 = smov (!%p236_p2), 113   ;;  %vm402_vm6 = vcmask (!%p236_p2), 908288   ;;  %vm466_vm10 = vcmask (!%p236_p2), 924672   ;;  %v653_v60 = vld [vmem:[%s1236_s4] sm:$0xff] (!%p236_p2) }
   0x6   : > { %239 = sbr.rel (%p236_p2) target bundleno = 559 (0x22f), region = 40  ;;  %309 = vst [vmem:[#allocation2 + $0x8] sm:$0xff] (!%p236_p2), %v1043_v1  ;;  %310 = vst [vmem:[#allocation2 + $0x10] sm:$0xff] (!%p236_p2), %v1043_v1  ;;  %994 = vset.pattern.permute.xlu1 (!%p236_p2), %v1043_v1  ;;  %993 = vset.pattern.permute.xlu0 (!%p236_p2), %v1043_v1  ;;  %s1045_s8 = smov (!%p236_p2), 111   ;;  %vm497_vm12 = vcmask (!%p236_p2), 1039360   ;;  %v654_v61 = vld [vmem:[%s1236_s4 + $0x8] sm:$0xff] (!%p236_p2) }
   0x7   : > { %v339_v2 = vand.u32 (!%p236_p2), 127, %v338_v0  ;;  %v391_v5 = vshrl.u32 (!%p236_p2), %v338_v0, 7  ;;  %s1046_s9 = smov (!%p236_p2), 127   ;;  %s1047_s10 = smov (!%p236_p2), 1   ;;  %v999_v56 = vld [vmem:[%s1235_s3 + $0x4] ss:$8 sps:$4 sm:$0xff] (!%p236_p2)  }
   0x8   : > { %s1048_s11 = smov (!%p236_p2), 15   ;;  %s1049_s12 = smov (!%p236_p2), 17   ;;  %v1002_v57 = vld [vmem:[%s1235_s3 + $0x14] ss:$8 sps:$4 sm:$0xff] (!%p236_p2)  }
   0x9   : > { %v340_v3 = vadd.s32 (!%p236_p2), 128, %v339_v2  ;;  %v345_v4 = vand.u32 (!%p236_p2), 15, %v339_v2  ;;  %v392_v10 = vsub.s32 (!%p236_p2), 0, %v391_v5  ;;  %v396_v16 = vsub.s32 (!%p236_p2), 4, %v391_v5  ;;  %s1050_s13 = smov (!%p236_p2), 16   ;;  %s1051_s18 = smov (!%p236_p2), 112  }
   0xa   : > { %v656_v62 = vld [vmem:[%s1236_s4 + $0x18] sm:$0xff] (!%p236_p2)  ;;  %v655_v63 = vld [vmem:[%s1236_s4 + $0x10] sm:$0xff] (!%p236_p2) }
   0xb   : > { %v352_v6 = vand.u32 (!%p236_p2), 15, %v340_v3  ;;  %v373_v7 = vadd.s32 (!%p236_p2), 1, %v345_v4  ;;  %v365_v8 = vadd.s32 (!%p236_p2), 4294967295, %v345_v4 }
   0xd   : > { %s1240_s22 = smov (!%p280_p3, %s921_s22), 1  ;;  %v374_v9 = vadd.s32 1, %v352_v6  ;;  %vm377_vm0 = vcmp.lt.s32.totalorder %v373_v7, 16  ;;  %v366_v11 = vadd.s32 4294967295, %v352_v6  ;;  %vm367_vm1 = vcmp.ge.s32.totalorder %v365_v8, 0 }
   0xe   : > { %s953_s23 = sshll.u32 %s1240_s22, 2  ;;  %s954_s24 = sshll.u32 %s1240_s22, 3 }
   0xf   : > { %s284_s27 = scalar_lea.vmem %s1232_s0, %s953_s23  ;;  %s289_s30 = scalar_lea.vmem %s1233_s1, %s954_s24  ;;  %vm378_vm2 = vcmp.lt.s32.totalorder %v374_v9, 16  ;;  %vm368_vm3 = vcmp.ge.s32.totalorder %v366_v11, 0 }
  0x10   : > { %v936_v12 = vld.sshfl [vmem:[%s284_s27] sm:$0x33 pattern:$0x76325410]  ;;  %vm452_vm4 = vmpackc.low %vm378_vm2, %vm377_vm0  ;;  %vm514_vm0 = vcmask 7168  }
  0x11   : > { %v326_v13 = vld [vmem:[%s289_s30] sm:$0xff]  ;;  %324 = vst [vmem:[#allocation2 + $0x8] sm:$0x3] %v936_v12  ;;  %v321_v15 = vcombine.high %v936_v12, %v936_v12  ;;  %v453_v18 = vsel %vm452_vm4, 65537, %v1043_v1  ;;  %vm388_vm5 = vmpackc.low %vm368_vm3, %vm367_vm1  ;;  %vm483_vm1 = vcmask 121856  }
  0x12   : > { %v937_v14 = vcombine.low %v326_v13, %v326_v13  ;;  %v938_v17 = vcombine.high %v326_v13, %v326_v13  ;;  %v457_v20 = vrot.slane %v453_v18, %v392_v10  ;;  %v389_v21 = vsel %vm388_vm5, 65537, %v1043_v1 }
  0x13   : > { %325 = vst [vmem:[#allocation2 + $0x10] sm:$0x3] %v321_v15  ;;  %v393_v23 = vrot.slane %v389_v21, %v392_v10  ;;  %v461_v24 = vrot.slane %v453_v18, %v396_v16  ;;  %v397_v25 = vrot.slane %v389_v21, %v396_v16  ;;  %vm419_vm5 = vcmask 138240  }
  0x14   : > { %v332_v19 = vrot.slane %v937_v14, 6  ;;  %v333_v22 = vrot.slane %v938_v17, 6  ;;  %462 = vrot.lane.b32.xlu1 %v457_v20, %s1044_s7 }
  0x15   : > { %398 = vrot.lane.b32.xlu0 %v393_v23, %s1045_s8 }
  0x16   : > { %336 = vst [vmem:[#allocation2 + $0x8] sm:$0x3c] %v332_v19  ;;  %337 = vst [vmem:[#allocation2 + $0x10] sm:$0x3c] %v333_v22 }
  0x18   : > { %464 = vrot.lane.b32.xlu1 %v461_v24, %s1044_s7 }
  0x19   : > { %400 = vrot.lane.b32.xlu0 %v397_v25, %s1045_s8 }
  0x1c   : > { %495 = vrot.lane.b32.xlu1 %v397_v25, %s1046_s9 }
  0x1d   : > { %493 = vrot.lane.b32.xlu0 %v393_v23, %s1046_s9  ;;  %v1121_v26 = vld [vmem:[#allocation2 + $0x8] sm:$0xff]  ;;  %v1123_v27 = vld [vmem:[#allocation2 + $0x10] sm:$0xff] }
  0x20   : > { %530 = vrot.lane.b32.xlu1 %v461_v24, %s1047_s10 }
  0x21   : > { %528 = vrot.lane.b32.xlu0 %v457_v20, %s1047_s10 }
  0x24   : > { %559 = vrot.lane.b32.xlu1 %v397_v25, %s1048_s11 }
  0x25   : > { %557 = vrot.lane.b32.xlu0 %v393_v23, %s1048_s11 }
  0x28   : > { %607 = vrot.lane.b32.xlu1 %v461_v24, %s1049_s12 }
  0x29   : > { %605 = vrot.lane.b32.xlu0 %v457_v20, %s1049_s12 }
  0x2c   : > { %434 = vrot.lane.b32.xlu1 %v1121_v26, %s1050_s13 }
  0x2d   : > { %436 = vrot.lane.b32.xlu0 %v1123_v27, %s1050_s13 }
  0x30   : > { %432 = vrot.lane.b32.xlu1 %v1043_v1, %s1050_s13 }
  0x31   : > { %413 = vrot.lane.b32.xlu0 %v1043_v1, %s1049_s12 }
  0x35   : > { %477 = vrot.lane.b32.xlu0 %v1043_v1, %s1048_s11 }
  0x86   : > { %v463_v28 = vpop.permute.xlu1 %462 }
  0x87   : > { %v399_v29 = vpop.permute.xlu0 %398 }
  0x8a   : > { %v465_v30 = vpop.permute.xlu1 %464 }
  0x8b   : > { %v401_v31 = vpop.permute.xlu0 %400  ;;  %vm470_vm7 = vcmp.ne.s16.totalorder %v465_v30, 0  ;;  %v467_v38 = vsel %vm466_vm10, %v463_v28, %v465_v30 }
  0x8c   : > { %v403_v32 = vsel %vm402_vm6, %v399_v29, %v401_v31  ;;  %vm406_vm8 = vcmp.ne.s16.totalorder %v401_v31, 0  ;;  %v473_v35 = vsel %vm470_vm7, %v1123_v27, 0  ;;  %vm469_vm13 = vcmp.ne.s16.totalorder %v467_v38, 0 }
  0x8d   : > { %v409_v33 = vsel %vm406_vm8, %v1123_v27, 0  ;;  %vm405_vm9 = vcmp.ne.s16.totalorder %v403_v32, 0  ;;  %v472_v43 = vsel %vm469_vm13, %v1121_v26, 0  ;;  %vm438_vm8 = vcmask 130048  }
  0x8e   : > { %417 = vrot.lane.b32.xlu1 %v409_v33, %s1049_s12  ;;  %v496_v34 = vpop.permute.xlu1 %495  ;;  %v408_v37 = vsel %vm405_vm9, %v1121_v26, 0  ;;  %943 = vmatprep.mubr.msk.bf16.mxu0 %vm438_vm8, %v999_v56 }
  0x8f   : > { %v494_v36 = vpop.permute.xlu0 %493  ;;  %vm501_vm11 = vcmp.ne.s16.totalorder %v496_v34, 0  ;;  %415 = vrot.lane.b32.xlu0 %v408_v37, %s1049_s12  ;;  %944 = vmatprep.mubr.msk.bf16.mxu1 %vm438_vm8, %v1002_v57 }
  0x90   : > { %v498_v39 = vsel %vm497_vm12, %v494_v36, %v496_v34  ;;  %v504_v40 = vsel %vm501_vm11, %v1123_v27, 0  ;;  %vm595_vm11 = vcmask 916480  }
  0x91   : > { %vm500_vm14 = vcmp.ne.s16.totalorder %v498_v39, 0 }
  0x92   : > { %481 = vrot.lane.b32.xlu1 %v473_v35, %s1048_s11  ;;  %v531_v41 = vpop.permute.xlu1 %530  ;;  %v503_v44 = vsel %vm500_vm14, %v1121_v26, 0 }
  0x93   : > { %v529_v42 = vpop.permute.xlu0 %528  ;;  %512 = vrot.lane.b32.xlu0 %v504_v40, %s1047_s10  ;;  %v997_v40 = vld [vmem:[%s1235_s3] ss:$8 sps:$4 sm:$0xff]  }
  0x94   : > { %vm533_vm15 = vcmp.ne.s16.totalorder %v529_v42, 0  ;;  %v532_v48 = vsel %vm514_vm0, %v529_v42, %v531_v41  ;;  %v1000_v41 = vld [vmem:[%s1235_s3 + $0x10] ss:$8 sps:$4 sm:$0xff]  }
  0x95   : > { %v536_v47 = vsel %vm533_vm15, %v1121_v26, 0  ;;  %vm534_vm3 = vcmp.ne.s16.totalorder %v532_v48, 0 }
  0x96   : > { %508 = vrot.lane.b32.xlu1 %v1043_v1, %s1047_s10  ;;  %v560_v45 = vpop.permute.xlu1 %559  ;;  %v537_v53 = vsel %vm534_vm3, %v1123_v27, 0 }
  0x97   : > { %v558_v46 = vpop.permute.xlu0 %557  ;;  %479 = vrot.lane.b32.xlu0 %v472_v43, %s1048_s11 }
  0x98   : > { %vm562_vm2 = vcmp.ne.s16.totalorder %v558_v46, 0  ;;  %v561_v49 = vsel %vm483_vm1, %v558_v46, %v560_v45 }
  0x99   : > { %v565_v50 = vsel %vm562_vm2, %v1121_v26, 0  ;;  %vm563_vm4 = vcmp.ne.s16.totalorder %v561_v49, 0 }
  0x9a   : > { %510 = vrot.lane.b32.xlu1 %v503_v44, %s1047_s10  ;;  %v608_v51 = vpop.permute.xlu1 %607  ;;  %v566_v54 = vsel %vm563_vm4, %v1123_v27, 0 }
  0x9b   : > { %542 = vrot.lane.b32.xlu0 %v536_v47, %s1046_s9  ;;  %v606_v52 = vpop.permute.xlu0 %605 }
  0x9c   : > { %v609_v55 = vsel %vm419_vm5, %v606_v52, %v608_v51  ;;  %vm610_vm9 = vcmp.ne.s16.totalorder %v606_v52, 0 }
  0x9d   : > { %vm611_vm7 = vcmp.ne.s16.totalorder %v609_v55, 0  ;;  %v613_v59 = vsel %vm610_vm9, %v1121_v26, 0 }
  0x9e   : > { %546 = vrot.lane.b32.xlu1 %v1043_v1, %s1046_s9  ;;  %v614_v58 = vsel %vm611_vm7, %v1123_v27, 0  ;;  %v435_v0 = vpop.permute.xlu1 %434 }
  0x9f   : > { %575 = vrot.lane.b32.xlu0 %v1043_v1, %s1044_s7 }
  0xa2   : > { %571 = vrot.lane.b32.xlu1 %v565_v50, %s1044_s7  ;;  %v433_v2 = vpop.permute.xlu1 %432 }
  0xa3   : > { %544 = vrot.lane.b32.xlu0 %v537_v53, %s1046_s9  ;;  %v439_v13 = vsel %vm438_vm8, %v433_v2, %v435_v0  ;;  %s1215_s9 = sshll.u32 %s1240_s22, 4 }
  0xa4   : > { %s294_s12 = scalar_lea.vmem %s1234_s2, %s1215_s9  ;;  %s304_s14 = scalar_lea.vmem %s1238_s6, %s1215_s9 }
  0xa5   : > { %s299_s17 = scalar_lea.vmem %s1237_s5, %s1215_s9 }
  0xa6   : > { %573 = vrot.lane.b32.xlu1 %v566_v54, %s1044_s7 }
  0xa7   : > { %591 = vrot.lane.b32.xlu0 %v1123_v27, %s1051_s18 }
  0xaa   : > { %593 = vrot.lane.b32.xlu1 %v1043_v1, %s1051_s18 }
  0xab   : > { %589 = vrot.lane.b32.xlu0 %v1121_v26, %s1051_s18 }
  0xae   : > { %621 = vrot.lane.b32.xlu1 %v614_v58, %s1045_s8 }
  0xaf   : > { %623 = vrot.lane.b32.xlu0 %v1043_v1, %s1045_s8  ;;  %v437_v1 = vpop.permute.xlu0 %436 }
  0xb0   : > { %v440_v10 = vsel %vm438_vm8, %v435_v0, %v437_v1 }
  0xb2   : > { %619 = vrot.lane.b32.xlu1 %v613_v59, %s1045_s8 }
  0xb3   : > { %659 = vperm.xlu0 %993, %v653_v60   ;;  %v414_v3 = vpop.permute.xlu0 %413 }
  0xb6   : > { %664 = vperm.xlu1 %994, %v654_v61  }
  0xb7   : > { %674 = vperm.xlu0 %993, %v656_v62   ;;  %v478_v4 = vpop.permute.xlu0 %477 }
  0xba   : > { %669 = vperm.xlu1 %994, %v655_v63  }
 0x100   : > { %v418_v5 = vpop.permute.xlu1 %417 }
 0x101   : > { %v416_v6 = vpop.permute.xlu0 %415 }
 0x102   : > { %v421_v8 = vsel %vm419_vm5, %v416_v6, %v418_v5  ;;  %v420_v9 = vsel %vm419_vm5, %v414_v3, %v416_v6 }
 0x103   : > { %702 = vmatprep.subr.bf16.mxu0 %v421_v8  ;;  %958 = vmatprep.subr.bf16.mxu1 %v421_v8 }
 0x104   : > { %v482_v7 = vpop.permute.xlu1 %481  ;;  %703 = vmatpush1.bf16.msra.mxu0 %v420_v9  ;;  %967 = vmatpush1.bf16.msra.mxu1 %v420_v9 }
 0x105   : > { %v513_v11 = vpop.permute.xlu0 %512  ;;  %704 = vmatprep.subr.bf16.mxu0 %v440_v10  ;;  %959 = vmatprep.subr.bf16.mxu1 %v440_v10 }
 0x108   : > { %v509_v12 = vpop.permute.xlu1 %508  ;;  %705 = vmatpush1.bf16.msra.mxu0 %v439_v13  ;;  %968 = vmatpush1.bf16.msra.mxu1 %v439_v13 }
 0x109   : > { %v480_v14 = vpop.permute.xlu0 %479 }
 0x10a   : > { %v485_v16 = vsel %vm483_vm1, %v480_v14, %v482_v7  ;;  %v484_v17 = vsel %vm483_vm1, %v478_v4, %v480_v14 }
 0x10b   : > { %706 = vmatprep.subr.bf16.mxu0 %v485_v16  ;;  %960 = vmatprep.subr.bf16.mxu1 %v485_v16 }
 0x10c   : > { %v511_v15 = vpop.permute.xlu1 %510  ;;  %707 = vmatpush1.bf16.msra.mxu0 %v484_v17  ;;  %969 = vmatpush1.bf16.msra.mxu1 %v484_v17  ;;  %v793_v17 = vld [vmem:[%s294_s12] sm:$0xff] }
 0x10d   : > { %v516_v18 = vsel %vm514_vm0, %v511_v15, %v513_v11  ;;  %v543_v19 = vpop.permute.xlu0 %542  ;;  %v515_v21 = vsel %vm514_vm0, %v509_v12, %v511_v15 }
 0x10e   : > { %708 = vmatprep.subr.bf16.mxu0 %v516_v18  ;;  %961 = vmatprep.subr.bf16.mxu1 %v516_v18 }
 0x110   : > { %v547_v20 = vpop.permute.xlu1 %546  ;;  %709 = vmatpush1.bf16.msra.mxu0 %v515_v21  ;;  %970 = vmatpush1.bf16.msra.mxu1 %v515_v21 }
 0x111   : > { %v576_v22 = vpop.permute.xlu0 %575  ;;  %710 = vmatprep.subr.bf16.mxu0 %v1123_v27  ;;  %962 = vmatprep.subr.bf16.mxu1 %v1123_v27 }
 0x114   : > { %v572_v23 = vpop.permute.xlu1 %571  ;;  %711 = vmatpush1.bf16.msra.mxu0 %v1121_v26  ;;  %971 = vmatpush1.bf16.msra.mxu1 %v1121_v26 }
 0x115   : > { %v545_v24 = vpop.permute.xlu0 %544 }
 0x116   : > { %v549_v28 = vsel %vm497_vm12, %v545_v24, %v547_v20  ;;  %v548_v29 = vsel %vm497_vm12, %v543_v19, %v545_v24 }
 0x117   : > { %712 = vmatprep.subr.bf16.mxu0 %v549_v28  ;;  %963 = vmatprep.subr.bf16.mxu1 %v549_v28 }
 0x118   : > { %v574_v25 = vpop.permute.xlu1 %573  ;;  %713 = vmatpush1.bf16.msra.mxu0 %v548_v29  ;;  %972 = vmatpush1.bf16.msra.mxu1 %v548_v29 }
 0x119   : > { %v578_v30 = vsel %vm466_vm10, %v574_v25, %v576_v22  ;;  %v592_v31 = vpop.permute.xlu0 %591  ;;  %v577_v32 = vsel %vm466_vm10, %v572_v23, %v574_v25  ;;  %v794_v22 = vld [vmem:[%s294_s12 + $0x8] sm:$0xff] }
 0x11a   : > { %714 = vmatprep.subr.bf16.mxu0 %v578_v30  ;;  %964 = vmatprep.subr.bf16.mxu1 %v578_v30 }
 0x11c   : > { %v594_v27 = vpop.permute.xlu1 %593  ;;  %715 = vmatpush1.bf16.msra.mxu0 %v577_v32  ;;  %973 = vmatpush1.bf16.msra.mxu1 %v577_v32 }
 0x11d   : > { %v597_v26 = vsel %vm595_vm11, %v592_v31, %v594_v27  ;;  %v590_v33 = vpop.permute.xlu0 %589 }
 0x11e   : > { %716 = vmatprep.subr.bf16.mxu0 %v597_v26  ;;  %965 = vmatprep.subr.bf16.mxu1 %v597_v26  ;;  %v596_v35 = vsel %vm595_vm11, %v590_v33, %v592_v31 }
 0x120   : > { %v622_v34 = vpop.permute.xlu1 %621  ;;  %717 = vmatpush1.bf16.msra.mxu0 %v596_v35  ;;  %974 = vmatpush1.bf16.msra.mxu1 %v596_v35 }
 0x121   : > { %v624_v36 = vpop.permute.xlu0 %623 }
 0x122   : > { %v626_v38 = vsel %vm402_vm6, %v622_v34, %v624_v36 }
 0x123   : > { %718 = vmatprep.subr.bf16.mxu0 %v626_v38  ;;  %966 = vmatprep.subr.bf16.mxu1 %v626_v38 }
 0x124   : > { %v620_v37 = vpop.permute.xlu1 %619 }
 0x125   : > { %v625_v39 = vsel %vm402_vm6, %v620_v37, %v622_v34 }
 0x126   : > { %719 = vmatpush1.bf16.msra.mxu0 %v625_v39  ;;  %975 = vmatpush1.bf16.msra.mxu1 %v625_v39 }
 0x129   : > { %735 = vmatmul.mubr.bf16.vlgmr.msra.gmra.mrb[0].mxu0 %v997_v40  ;;  %745 = vmatmul.mubr.bf16.vlgmr.msra.gmra.mrb[0].mxu1 %v1000_v41 }
 0x132   : > { %v660_v42 = vpop.permute.xlu0 %659 }
 0x135   : > { %v665_v43 = vpop.permute.xlu1 %664 }
 0x136   : > { %v675_v59 = vpop.permute.xlu0 %674 }
 0x139   : > { %v670_v61 = vpop.permute.xlu1 %669 }
 0x1fc   : > { %v736_v44 = vpop.f32.mrb[0].mxu0  ;;  %v746_v45 = vpop.f32.mrb[0].mxu1 }
 0x1fd   : > { %v737_v46 = vadd.f32 %v736_v44, %v660_v42  ;;  %v738_v47 = vpop.f32.mrb[1].mxu0  ;;  %v748_v48 = vpop.f32.mrb[1].mxu1  ;;  %v747_v0 = vadd.f32 %v746_v45, %v670_v61 }
 0x1fe   : > { %v739_v49 = vadd.f32 %v738_v47, %v660_v42  ;;  %v740_v50 = vpop.f32.mrb[2].mxu0  ;;  %v750_v51 = vpop.f32.mrb[2].mxu1  ;;  %v749_v1 = vadd.f32 %v748_v48, %v670_v61 }
 0x1ff   : > { %v945_v52 = vmul.f32 -1.442695, %v737_v46  ;;  %v741_v53 = vadd.f32 %v740_v50, %v665_v43  ;;  %v742_v54 = vpop.f32.mrb[3].mxu0  ;;  %v752_v55 = vpop.f32.mrb[3].mxu1  ;;  %v751_v62 = vadd.f32 %v750_v51, %v675_v59 }
 0x200   : > { %v946_v56 = vmul.f32 -1.442695, %v739_v49  ;;  %v743_v57 = vadd.f32 %v742_v54, %v665_v43  ;;  %v753_v63 = vadd.f32 %v752_v55, %v675_v59 }
 0x201   : > { %1003 = vpow2.f32 %v945_v52  ;;  %v947_v58 = vmul.f32 -1.442695, %v741_v53  ;;  %v949_v2 = vmul.f32 -1.442695, %v751_v62 }
 0x202   : > { %1005 = vpow2.f32 %v946_v56  ;;  %v948_v60 = vmul.f32 -1.442695, %v743_v57  ;;  %v950_v3 = vmul.f32 -1.442695, %v753_v63 }
 0x203   : > { %1007 = vpow2.f32 %v947_v58 }
 0x204   : > { %1009 = vpow2.f32 %v948_v60 }
 0x205   : > { %1011 = vtanh.f32 %v747_v0 }
 0x206   : > { %1013 = vtanh.f32 %v749_v1 }
 0x207   : > { %1015 = vpow2.f32 %v949_v2 }
 0x208   : > { %1017 = vpow2.f32 %v950_v3 }
 0x20b   : > { %v1004_v4 = vpop.eup %1003 }
 0x20c   : > { %v1006_v5 = vpop.eup %1005  ;;  %v761_v6 = vadd.f32 1.0, %v1004_v4 }
 0x20d   : > { %v1008_v7 = vpop.eup %1007  ;;  %v762_v8 = vadd.f32 1.0, %v1006_v5 }
 0x20e   : > { %1019 = vrcp.f32 %v761_v6  ;;  %v773_v9 = vadd.f32 1.0, %v1008_v7  ;;  %v1010_v10 = vpop.eup %1009 }
 0x20f   : > { %1021 = vrcp.f32 %v762_v8  ;;  %v774_v11 = vadd.f32 1.0, %v1010_v10  ;;  %v1012_v12 = vpop.eup %1011 }
 0x210   : > { %1023 = vrcp.f32 %v773_v9  ;;  %v1014_v13 = vpop.eup %1013 }
 0x211   : > { %1025 = vrcp.f32 %v774_v11  ;;  %v1016_v14 = vpop.eup %1015 }
 0x212   : > { %v1018_v15 = vpop.eup %1017  ;;  %v787_v21 = vadd.f32 1.0, %v1016_v14 }
 0x213   : > { %v788_v28 = vadd.f32 1.0, %v1018_v15 }
 0x214   : > { %1027 = vrcp.f32 %v787_v21 }
 0x218   : > { %v1020_v16 = vpop.eup %1019 }
 0x219   : > { %v1022_v18 = vpop.eup %1021  ;;  %v797_v19 = vmul.f32 %v1020_v16, %v1012_v12 }
 0x21a   : > { %v1024_v20 = vpop.eup %1023  ;;  %v798_v23 = vmul.f32 %v1022_v18, %v1014_v13 }
 0x21b   : > { %v795_v24 = vmul.f32 %v1024_v20, %v793_v17  ;;  %v1026_v25 = vpop.eup %1025 }
 0x21c   : > { %v796_v29 = vmul.f32 %v1026_v25, %v794_v22 }
 0x21d   : > { %v799_v30 = vadd.f32 %v797_v19, %v795_v24 }
 0x21e   : > { %v800_v31 = vadd.f32 %v798_v23, %v796_v29  ;;  %v1028_v27 = vpop.eup %1027 }
 0x21f   : > { %1029 = vtanh.f32 %v799_v30  ;;  %805 = vst [vmem:[%s304_s14] sm:$0xff] %v799_v30 }
 0x220   : > { %1031 = vrcp.f32 %v788_v28  ;;  %806 = vst [vmem:[%s304_s14 + $0x8] sm:$0xff] %v800_v31 }
 0x221   : > { %1033 = vtanh.f32 %v800_v31 }
 0x229   : > { %v1030_v32 = vpop.eup %1029 }
 0x22a   : > { %v1032_v26 = vpop.eup %1031  ;;  %v803_v33 = vmul.f32 %v1030_v32, %v1028_v27 }
 0x22b   : > { %v1034_v34 = vpop.eup %1033 }
 0x22c   : > { %v804_v35 = vmul.f32 %v1034_v34, %v1032_v26  ;;  %807 = vst [vmem:[%s299_s17] sm:$0xff] %v803_v33 }
 0x22e   : > { %808 = vst [vmem:[%s299_s17 + $0x8] sm:$0xff] %v804_v35 }
 0x22f PF: > { %s17_s21 = sadd.s32 1, %s1041_s21  }
 0x230   : > { %p14_p4 = scmp.ge.s32.totalorder %s17_s21, 4  }
 0x232   :  { %16 = sbr.rel (!%p14_p4) target bundleno = 1 (0x1), region = 88 }

</bundles_post_ra>
